<compile_context>
chip_gen: v7x
topology: tpu7x:2x2x1
jax: 0.10.0
libtpu: 0.0.40
codegen_flags: <defaults>
</compile_context>

<pallas_src>
import jax
import jax.numpy as jnp
from jax import lax
from jax.experimental import pallas as pl
from jax.experimental.pallas import tpu as pltpu


def _round_up(a, m):
    return (a + m - 1) // m * m


def _make_kernel(W, KW, T, R, Coutp):
    def kernel(xm_ref, xh_ref, wm_ref, bias_ref, o_ref):
        # xm_ref  : (1, C, R)       VMEM  main band of flattened spatial positions (lane axis)
        # xh_ref  : (1, C, HB)      VMEM  halo positions immediately following the band
        # wm_ref  : (T, Coutp, C)   VMEM  merged depthwise*pointwise weights, one slab per tap
        # bias_ref: (Coutp, 1)      VMEM  pointwise bias (f32)
        # o_ref   : (1, Coutp, R)   VMEM  output band, lane-dense along the spatial axis
        #
        # Lane-axis concat of two 128-aligned pieces (cheap tile placement), then one static
        # lane-offset slice + MXU matmul per tap, accumulated in an f32 SSA value.  The output
        # tile is stored exactly once, already cast to the output dtype.
        xa = jnp.concatenate([xm_ref[0], xh_ref[0]], axis=-1)        # (C, R + HB)
        acc = jnp.broadcast_to(bias_ref[...], (Coutp, R))            # f32, bias fused into init
        for t in range(T):
            off = (t // KW) * W + (t % KW)                           # static tap offset
            a_t = xa[:, off:off + R]                                 # (C, R)
            acc = acc + jnp.dot(wm_ref[t], a_t,
                                preferred_element_type=jnp.float32)  # (Coutp, R) f32
        o_ref[0] = acc.astype(o_ref.dtype)

    return kernel


def separable_conv2d(x, w_dw, w_pw, bias, *, band_target=512):
    """Fused SeparableConv2d forward (module defaults: VALID padding, stride 1).

    x: (N, C, H, W); w_dw: (C, 1, KH, KW); w_pw: (Cout, C, 1, 1); bias: (Cout,).
    Returns (N, Cout, H-KH+1, W-KW+1) in x.dtype.
    """
    N, C, H, W = x.shape
    Cout = w_pw.shape[0]
    KH, KW = w_dw.shape[-2:]
    Hout, Wout = H - KH + 1, W - KW + 1
    HW = H * W
    T = KH * KW
    cdt = x.dtype
    f32 = jnp.float32
    Coutp = _round_up(Cout, 8)                         # sublane pad only (not 128)

    # Band tiling of the flattened spatial (lane) axis, with a 128-aligned halo block.
    halo = (KH - 1) * W + (KW - 1)                     # max tap offset
    HB = max(_round_up(halo, 128), 128)                # halo block width (lane-aligned)
    R = _round_up(min(HW, band_target), 128)           # band width
    R = _round_up(max(R, HB), HB)                      # HB must divide R
    nb = -(-HW // R)                                   # bands per image
    halo_stride = R // HB
    Lp = nb * R + HB                                   # padded flattened-spatial length

    # Input stays in its native NCHW plane layout: just a view + small trailing zero pad.
    x_p = jnp.pad(x.reshape(N, C, HW), ((0, 0), (0, 0), (0, Lp - HW)))

    # Merged weights wm[t, o, c] = w_dw[c, 0, i, j] * w_pw[o, c]  with t = i*KW + j.
    wdw = w_dw.reshape(C, T).astype(f32)               # (C, T)
    wpw = w_pw.reshape(Cout, C).astype(f32)            # (Cout, C)
    wm = wdw.T[:, None, :] * wpw[None, :, :]           # (T, Cout, C), product formed in f32
    wm = jnp.pad(wm, ((0, 0), (0, Coutp - Cout), (0, 0))).astype(cdt)
    bvec = jnp.pad(bias.astype(f32), (0, Coutp - Cout)).reshape(Coutp, 1)

    kernel = _make_kernel(W, KW, T, R, Coutp)

    itemsize = jnp.dtype(cdt).itemsize
    flops = 2 * N * nb * R * T * C * Coutp
    bytes_accessed = (N * nb * (R + HB) * C * itemsize          # activation reads (incl. halo)
                      + T * Coutp * C * itemsize + Coutp * 4    # weights + bias
                      + N * nb * R * Coutp * itemsize)          # output writeback

    out_rows = pl.pallas_call(
        kernel,
        out_shape=jax.ShapeDtypeStruct((N, Coutp, nb * R), cdt),
        grid=(N, nb),
        in_specs=[
            pl.BlockSpec((1, C, R), lambda n, b: (n, 0, b)),
            pl.BlockSpec((1, C, HB), lambda n, b: (n, 0, (b + 1) * halo_stride)),
            pl.BlockSpec((T, Coutp, C), lambda n, b: (0, 0, 0)),
            pl.BlockSpec((Coutp, 1), lambda n, b: (0, 0)),
        ],
        out_specs=pl.BlockSpec((1, Coutp, R), lambda n, b: (n, 0, b)),
        compiler_params=pltpu.CompilerParams(
            dimension_semantics=("parallel", "parallel"),
        ),
        cost_estimate=pl.CostEstimate(
            flops=int(flops), transcendentals=0, bytes_accessed=int(bytes_accessed)),
    )(x_p, x_p, wm, bvec)

    # Lane p = y*W + x of image n holds out[n, :, y, x] for y < Hout, x < Wout; remaining lanes
    # are wrap-around garbage from the shifted-lane-slice trick and are discarded here.
    out = out_rows[:, :Cout, :HW].reshape(N, Cout, H, W)
    return out[:, :, :Hout, :Wout]


if __name__ == "__main__":
    N, C, Cout, H, W, K = 2, 4, 8, 16, 16, 3

    key = jax.random.PRNGKey(0)
    k1, k2, k3, k4 = jax.random.split(key, 4)

    x = jax.random.normal(k1, (N, C, H, W), dtype=jnp.float32)
    # Parameter shapes mirror the PyTorch module:
    #   depthwise.weight: (C, 1, K, K), pointwise.weight: (Cout, C, 1, 1), pointwise.bias: (Cout,)
    w_dw = 0.1 * jax.random.normal(k2, (C, 1, K, K), dtype=jnp.float32)
    w_pw = 0.1 * jax.random.normal(k3, (Cout, C, 1, 1), dtype=jnp.float32)
    bias = 0.1 * jax.random.normal(k4, (Cout,), dtype=jnp.float32)

    out = separable_conv2d(x, w_dw, w_pw, bias)
    out = jax.block_until_ready(out)

    # Pure-JAX reference (same semantics as the PyTorch forward with defaults).
    ref_dw = lax.conv_general_dilated(
        x, w_dw, window_strides=(1, 1), padding="VALID",
        dimension_numbers=("NCHW", "OIHW", "NCHW"), feature_group_count=C)
    ref = lax.conv_general_dilated(
        ref_dw, w_pw, window_strides=(1, 1), padding="VALID",
        dimension_numbers=("NCHW", "OIHW", "NCHW")) + bias[None, :, None, None]

    assert out.shape == (N, Cout, H - K + 1, W - K + 1), out.shape
    assert jnp.allclose(out, ref, atol=5e-3, rtol=5e-3), float(jnp.max(jnp.abs(out - ref)))
    print("KERNEL_OK")
</pallas_src>

<mosaic_0001>
module attributes {stable_mosaic.version = 11 : i64} {
  func.func @kernel(%arg0: i32, %arg1: i32, %arg2: memref<1x4x256xf32, #tpu.memory_space<vmem>>, %arg3: memref<1x4x128xf32, #tpu.memory_space<vmem>>, %arg4: memref<9x8x4xf32, #tpu.memory_space<vmem>>, %arg5: memref<8x1xf32, #tpu.memory_space<vmem>>, %arg6: memref<1x8x256xf32, #tpu.memory_space<vmem>>) attributes {dimension_semantics = [#tpu.dimension_semantics<parallel>, #tpu.dimension_semantics<parallel>], iteration_bounds = array<i64: 2, 1>, scalar_prefetch = 0 : i64, scratch_operands = 0 : i64, tpu.core_type = #tpu.core_type<tc>, window_params = [{transform_indices = @transform_0, window_bounds = array<i64: 1, 4, 256>}, {transform_indices = @transform_1, window_bounds = array<i64: 1, 4, 128>}, {pipeline_mode = #tpu.pipeline_mode<synchronous>, transform_indices = @transform_2, window_bounds = array<i64: 9, 8, 4>}, {pipeline_mode = #tpu.pipeline_mode<synchronous>, transform_indices = @transform_3, window_bounds = array<i64: 8, 1>}, {transform_indices = @transform_4, window_bounds = array<i64: 1, 8, 256>}]} {
    %c0 = arith.constant 0 : index
    %c0_0 = arith.constant 0 : index
    %c0_1 = arith.constant 0 : index
    %0 = vector.load %arg2[%c0, %c0_0, %c0_1] : memref<1x4x256xf32, #tpu.memory_space<vmem>>, vector<1x4x256xf32>
    %1 = vector.shape_cast %0 : vector<1x4x256xf32> to vector<4x256xf32>
    %c0_2 = arith.constant 0 : index
    %c0_3 = arith.constant 0 : index
    %c0_4 = arith.constant 0 : index
    %2 = vector.load %arg3[%c0_2, %c0_3, %c0_4] : memref<1x4x128xf32, #tpu.memory_space<vmem>>, vector<1x4x128xf32>
    %3 = vector.shape_cast %2 : vector<1x4x128xf32> to vector<4x128xf32>
    %4 = tpu.concatenate %1, %3 in 1 : vector<4x256xf32>, vector<4x128xf32> -> vector<4x384xf32>
    %c0_5 = arith.constant 0 : index
    %c0_6 = arith.constant 0 : index
    %5 = vector.load %arg5[%c0_5, %c0_6] : memref<8x1xf32, #tpu.memory_space<vmem>>, vector<8x1xf32>
    %6 = vector.shape_cast %5 : vector<8x1xf32> to vector<8x1xf32>
    %7 = vector.broadcast %6 : vector<8x1xf32> to vector<8x256xf32>
    %8 = vector.extract_strided_slice %4 {offsets = [0, 0], sizes = [4, 256], strides = [1, 1]} : vector<4x384xf32> to vector<4x256xf32>
    %c0_7 = arith.constant 0 : index
    %c0_8 = arith.constant 0 : index
    %c0_9 = arith.constant 0 : index
    %9 = vector.load %arg4[%c0_7, %c0_8, %c0_9] : memref<9x8x4xf32, #tpu.memory_space<vmem>>, vector<1x8x4xf32>
    %10 = vector.shape_cast %9 : vector<1x8x4xf32> to vector<8x4xf32>
    %cst = arith.constant dense<0.000000e+00> : vector<8x256xf32>
    %11 = tpu.matmul %10, %8, %cst {dimension_numbers = #tpu.dot_dimension_numbers<[1], [0], [0], [1], [0, 0, 1, 1], [], []>} : vector<8x4xf32>, vector<4x256xf32>, vector<8x256xf32> -> vector<8x256xf32>
    %12 = arith.addf %7, %11 : vector<8x256xf32>
    %13 = vector.extract_strided_slice %4 {offsets = [0, 1], sizes = [4, 256], strides = [1, 1]} : vector<4x384xf32> to vector<4x256xf32>
    %c1 = arith.constant 1 : index
    %c0_10 = arith.constant 0 : index
    %c0_11 = arith.constant 0 : index
    %14 = vector.load %arg4[%c1, %c0_10, %c0_11] : memref<9x8x4xf32, #tpu.memory_space<vmem>>, vector<1x8x4xf32>
    %15 = vector.shape_cast %14 : vector<1x8x4xf32> to vector<8x4xf32>
    %cst_12 = arith.constant dense<0.000000e+00> : vector<8x256xf32>
    %16 = tpu.matmul %15, %13, %cst_12 {dimension_numbers = #tpu.dot_dimension_numbers<[1], [0], [0], [1], [0, 0, 1, 1], [], []>} : vector<8x4xf32>, vector<4x256xf32>, vector<8x256xf32> -> vector<8x256xf32>
    %17 = arith.addf %12, %16 : vector<8x256xf32>
    %18 = vector.extract_strided_slice %4 {offsets = [0, 2], sizes = [4, 256], strides = [1, 1]} : vector<4x384xf32> to vector<4x256xf32>
    %c2 = arith.constant 2 : index
    %c0_13 = arith.constant 0 : index
    %c0_14 = arith.constant 0 : index
    %19 = vector.load %arg4[%c2, %c0_13, %c0_14] : memref<9x8x4xf32, #tpu.memory_space<vmem>>, vector<1x8x4xf32>
    %20 = vector.shape_cast %19 : vector<1x8x4xf32> to vector<8x4xf32>
    %cst_15 = arith.constant dense<0.000000e+00> : vector<8x256xf32>
    %21 = tpu.matmul %20, %18, %cst_15 {dimension_numbers = #tpu.dot_dimension_numbers<[1], [0], [0], [1], [0, 0, 1, 1], [], []>} : vector<8x4xf32>, vector<4x256xf32>, vector<8x256xf32> -> vector<8x256xf32>
    %22 = arith.addf %17, %21 : vector<8x256xf32>
    %23 = vector.extract_strided_slice %4 {offsets = [0, 16], sizes = [4, 256], strides = [1, 1]} : vector<4x384xf32> to vector<4x256xf32>
    %c3 = arith.constant 3 : index
    %c0_16 = arith.constant 0 : index
    %c0_17 = arith.constant 0 : index
    %24 = vector.load %arg4[%c3, %c0_16, %c0_17] : memref<9x8x4xf32, #tpu.memory_space<vmem>>, vector<1x8x4xf32>
    %25 = vector.shape_cast %24 : vector<1x8x4xf32> to vector<8x4xf32>
    %cst_18 = arith.constant dense<0.000000e+00> : vector<8x256xf32>
    %26 = tpu.matmul %25, %23, %cst_18 {dimension_numbers = #tpu.dot_dimension_numbers<[1], [0], [0], [1], [0, 0, 1, 1], [], []>} : vector<8x4xf32>, vector<4x256xf32>, vector<8x256xf32> -> vector<8x256xf32>
    %27 = arith.addf %22, %26 : vector<8x256xf32>
    %28 = vector.extract_strided_slice %4 {offsets = [0, 17], sizes = [4, 256], strides = [1, 1]} : vector<4x384xf32> to vector<4x256xf32>
    %c4 = arith.constant 4 : index
    %c0_19 = arith.constant 0 : index
    %c0_20 = arith.constant 0 : index
    %29 = vector.load %arg4[%c4, %c0_19, %c0_20] : memref<9x8x4xf32, #tpu.memory_space<vmem>>, vector<1x8x4xf32>
    %30 = vector.shape_cast %29 : vector<1x8x4xf32> to vector<8x4xf32>
    %cst_21 = arith.constant dense<0.000000e+00> : vector<8x256xf32>
    %31 = tpu.matmul %30, %28, %cst_21 {dimension_numbers = #tpu.dot_dimension_numbers<[1], [0], [0], [1], [0, 0, 1, 1], [], []>} : vector<8x4xf32>, vector<4x256xf32>, vector<8x256xf32> -> vector<8x256xf32>
    %32 = arith.addf %27, %31 : vector<8x256xf32>
    %33 = vector.extract_strided_slice %4 {offsets = [0, 18], sizes = [4, 256], strides = [1, 1]} : vector<4x384xf32> to vector<4x256xf32>
    %c5 = arith.constant 5 : index
    %c0_22 = arith.constant 0 : index
    %c0_23 = arith.constant 0 : index
    %34 = vector.load %arg4[%c5, %c0_22, %c0_23] : memref<9x8x4xf32, #tpu.memory_space<vmem>>, vector<1x8x4xf32>
    %35 = vector.shape_cast %34 : vector<1x8x4xf32> to vector<8x4xf32>
    %cst_24 = arith.constant dense<0.000000e+00> : vector<8x256xf32>
    %36 = tpu.matmul %35, %33, %cst_24 {dimension_numbers = #tpu.dot_dimension_numbers<[1], [0], [0], [1], [0, 0, 1, 1], [], []>} : vector<8x4xf32>, vector<4x256xf32>, vector<8x256xf32> -> vector<8x256xf32>
    %37 = arith.addf %32, %36 : vector<8x256xf32>
    %38 = vector.extract_strided_slice %4 {offsets = [0, 32], sizes = [4, 256], strides = [1, 1]} : vector<4x384xf32> to vector<4x256xf32>
    %c6 = arith.constant 6 : index
    %c0_25 = arith.constant 0 : index
    %c0_26 = arith.constant 0 : index
    %39 = vector.load %arg4[%c6, %c0_25, %c0_26] : memref<9x8x4xf32, #tpu.memory_space<vmem>>, vector<1x8x4xf32>
    %40 = vector.shape_cast %39 : vector<1x8x4xf32> to vector<8x4xf32>
    %cst_27 = arith.constant dense<0.000000e+00> : vector<8x256xf32>
    %41 = tpu.matmul %40, %38, %cst_27 {dimension_numbers = #tpu.dot_dimension_numbers<[1], [0], [0], [1], [0, 0, 1, 1], [], []>} : vector<8x4xf32>, vector<4x256xf32>, vector<8x256xf32> -> vector<8x256xf32>
    %42 = arith.addf %37, %41 : vector<8x256xf32>
    %43 = vector.extract_strided_slice %4 {offsets = [0, 33], sizes = [4, 256], strides = [1, 1]} : vector<4x384xf32> to vector<4x256xf32>
    %c7 = arith.constant 7 : index
    %c0_28 = arith.constant 0 : index
    %c0_29 = arith.constant 0 : index
    %44 = vector.load %arg4[%c7, %c0_28, %c0_29] : memref<9x8x4xf32, #tpu.memory_space<vmem>>, vector<1x8x4xf32>
    %45 = vector.shape_cast %44 : vector<1x8x4xf32> to vector<8x4xf32>
    %cst_30 = arith.constant dense<0.000000e+00> : vector<8x256xf32>
    %46 = tpu.matmul %45, %43, %cst_30 {dimension_numbers = #tpu.dot_dimension_numbers<[1], [0], [0], [1], [0, 0, 1, 1], [], []>} : vector<8x4xf32>, vector<4x256xf32>, vector<8x256xf32> -> vector<8x256xf32>
    %47 = arith.addf %42, %46 : vector<8x256xf32>
    %48 = vector.extract_strided_slice %4 {offsets = [0, 34], sizes = [4, 256], strides = [1, 1]} : vector<4x384xf32> to vector<4x256xf32>
    %c8 = arith.constant 8 : index
    %c0_31 = arith.constant 0 : index
    %c0_32 = arith.constant 0 : index
    %49 = vector.load %arg4[%c8, %c0_31, %c0_32] : memref<9x8x4xf32, #tpu.memory_space<vmem>>, vector<1x8x4xf32>
    %50 = vector.shape_cast %49 : vector<1x8x4xf32> to vector<8x4xf32>
    %cst_33 = arith.constant dense<0.000000e+00> : vector<8x256xf32>
    %51 = tpu.matmul %50, %48, %cst_33 {dimension_numbers = #tpu.dot_dimension_numbers<[1], [0], [0], [1], [0, 0, 1, 1], [], []>} : vector<8x4xf32>, vector<4x256xf32>, vector<8x256xf32> -> vector<8x256xf32>
    %52 = arith.addf %47, %51 : vector<8x256xf32>
    %c0_34 = arith.constant 0 : index
    %c0_35 = arith.constant 0 : index
    %c0_36 = arith.constant 0 : index
    %53 = vector.load %arg6[%c0_34, %c0_35, %c0_36] : memref<1x8x256xf32, #tpu.memory_space<vmem>>, vector<1x8x256xf32>
    %54 = vector.shape_cast %53 : vector<1x8x256xf32> to vector<8x256xf32>
    %55 = vector.shape_cast %52 : vector<8x256xf32> to vector<1x8x256xf32>
    tpu.vector_store %arg6[%c0_34, %c0_35, %c0_36], %55 {strides = array<i32>} : memref<1x8x256xf32, #tpu.memory_space<vmem>>, vector<1x8x256xf32>,
    return
  }
  func.func @transform_0(%arg0: i32, %arg1: i32) -> (i32, i32, i32) {
    %c0_i32 = arith.constant 0 : i32
    %c0_i32_0 = arith.constant 0 : i32
    return %arg0, %c0_i32, %arg1 : i32, i32, i32
  }
  func.func @transform_1(%arg0: i32, %arg1: i32) -> (i32, i32, i32) {
    %c1_i32 = arith.constant 1 : i32
    %0 = arith.addi %arg1, %c1_i32 : i32
    %c2_i32 = arith.constant 2 : i32
    %1 = arith.muli %0, %c2_i32 : i32
    %c0_i32 = arith.constant 0 : i32
    %c0_i32_0 = arith.constant 0 : i32
    return %arg0, %c0_i32, %1 : i32, i32, i32
  }
  func.func @transform_2(%arg0: i32, %arg1: i32) -> (i32, i32, i32) {
    %c0_i32 = arith.constant 0 : i32
    %c0_i32_0 = arith.constant 0 : i32
    %c0_i32_1 = arith.constant 0 : i32
    %c0_i32_2 = arith.constant 0 : i32
    return %c0_i32, %c0_i32_0, %c0_i32_1 : i32, i32, i32
  }
  func.func @transform_3(%arg0: i32, %arg1: i32) -> (i32, i32) {
    %c0_i32 = arith.constant 0 : i32
    %c0_i32_0 = arith.constant 0 : i32
    %c0_i32_1 = arith.constant 0 : i32
    return %c0_i32, %c0_i32_0 : i32, i32
  }
  func.func @transform_4(%arg0: i32, %arg1: i32) -> (i32, i32, i32) {
    %c0_i32 = arith.constant 0 : i32
    %c0_i32_0 = arith.constant 0 : i32
    return %arg0, %c0_i32, %arg1 : i32, i32, i32
  }
}

</mosaic_0001>

<bundles_post_ra>
// kernel: tpu_custom_call.1
= control target key start
LH: loop header
LB: loop body
LE: loop exit
PB: predicated region body
PF: predicated region fallthrough
CT: control target
= control target key end

     0   :  { %9 = vsyncpa [#allocation3], 0  ;;  %s1663_s0 = inlined_call_operand.vmem [shape: f32[2,4,384], index: 0, kind: input, shape index: {}]   ;;  %s1664_s1 = inlined_call_operand.vmem [shape: f32[2,4,384], index: 1, kind: input, shape index: {}]   ;;  %s1665_s2 = inlined_call_operand.vmem [shape: f32[9,8,4], index: 2, kind: input, shape index: {}]   ;;  %s1666_s3 = inlined_call_operand.vmem [shape: f32[8,1], index: 3, kind: input, shape index: {}]   ;;  %s1667_s4 = inlined_call_operand.hbm [shape: f32[2,8,256], index: 4, kind: output, shape index: {}]  }
   0x1   :  { %11 = vsyncpa [#allocation3 + $0x1], 0  ;;  %s1482_s15 = smov 0   ;;  %s1484_s16 = smov 0  }
   0x2   :  { %s1486_s17 = smov 0   ;;  %s1488_s18 = smov 0  }
   0x3   :  { %s1490_s19 = smov 0   ;;  %s1492_s20 = smov 0  }
   0x4 LB: > { %s1227_s21 = sadd.s32 4294967295, %s1444_s20   ;;  %s1228_s22 = sadd.s32 4294967294, %s1444_s20   ;;  %s1444_s20 = sphi %s1492_s20, %s17_s20   ;;  %s1440_s19 = sphi %s1490_s19, %s1674_s19   ;;  %s1436_s18 = sphi %s1488_s18, %s1673_s18   ;;  %s1432_s17 = sphi %s1486_s17, %s1672_s17   ;;  %s1428_s16 = sphi %s1484_s16, %s1671_s16   ;;  %s1424_s15 = sphi %s1482_s15, %s1670_s15  }
   0x5   : > { %s29_s23 = sadd.s32 1, %s1440_s19  ;;  %s140_s24 = sadd.s32 1, %s1432_s17 }
   0x6   : > { %p31_p0 = scmp.ge.s32.totalorder %s29_s23, 2  ;;  %p150_p1 = scmp.ne.s32.totalorder %s1432_s17, %s1428_s16 }
   0x7   : > { %p151_p2 = scmp.eq.s32.totalorder %s1227_s21, 1  ;;  %p156_p3 = scmp.ne.s32.totalorder %s1428_s16, %s1424_s15 }
   0x8   : > { %s1676_s23 = smov (%p31_p0, %s29_s23), 0  ;;  %p157_p5 = scmp.eq.s32.totalorder %s1228_s22, 1 }
   0x9   : > { %p1522_p4 = por %p151_p2, %p150_p1  ;;  %s135_s26 = ssub.s32 %s1440_s19, %s1676_s23 }
   0xa   : > { %p1231_p6 = scmp.ge.s32.totalorder %s1444_s20, 1  ;;  %p138_p7 = scmp.eq.s32.totalorder %s135_s26, 0 }
   0xb   : > { %p1529_p8 = por %p157_p5, %p156_p3  ;;  %p217_p9 = scmp.lt.s32.totalorder %s1444_s20, 3 }
   0xc   : > { %s1535_s28 = scalar_select %p138_p7, %s1432_s17, %s140_s24  }
   0xd   : > { %p218_p10 = pnand %p1231_p6, %p217_p9 }
   0xe   : > { %p266_p11 = scmp.lt.s32.totalorder (!%p218_p10), %s1436_s18, 1  ;;  %v1446_v1 = vmov (!%p218_p10), 0.0   ;;  %s1447_s12 = smov (!%p218_p10), 111   ;;  %vm307_vm0 = vcmask (!%p218_p10), 1043456   ;;  %vm303_vm1 = vcmask (!%p218_p10), 31744   ;;  %v302_v4 = vld [vmem:[%s1665_s2] sm:$0xff] (!%p218_p10) }
   0xf   : > { %221 = sbr.rel (%p218_p10) target bundleno = 420 (0x1a4), region = 36  ;;  %741 = vmatprep.mubr.f32.mxu0 (!%p218_p10), %v1446_v1  ;;  %376 = vmatprep.mubr.f32.mxu1 (!%p218_p10), %v1446_v1  ;;  %s1448_s13 = smov (!%p218_p10), 110   ;;  %v1454_v5 = vmov (!%p218_p10), 0   ;;  %v296_v6 = vld [vmem:[%s1666_s3] sm:$0xff] (!%p218_p10)  ;;  %vm667_vm2 = vcmask (!%p218_p10), 908288   ;;  %vm758_vm3 = vcmask (!%p218_p10), 900096  }
  0x10   : > { %s1449_s22 = smov (!%p218_p10), 127   ;;  %s1450_s24 = smov (!%p218_p10), 96   ;;  %1364 = vset.pattern.permute.xlu0 (!%p218_p10), %v1454_v5  ;;  %v1250_v15 = vld [vmem:[%s1665_s2 + $0x20] sm:$0xff] (!%p218_p10)  ;;  %vm394_vm4 = vcmask (!%p218_p10), 1039360   ;;  %v1238_v23 = vld [vmem:[%s1665_s2 + $0x8] sm:$0xff] (!%p218_p10)  ;;  %vm849_vm5 = vcmask (!%p218_p10), 785408  }
  0x11   : > { %s1451_s26 = smov (!%p218_p10), 126   ;;  %s1455_s5 = smov (!%p218_p10), 94   ;;  %v1254_v25 = vld [vmem:[%s1665_s2 + $0x28] sm:$0xff] (!%p218_p10)  ;;  %vm485_vm6 = vcmask (!%p218_p10), 1031168   ;;  %v1258_v33 = vld [vmem:[%s1665_s2 + $0x30] sm:$0xff] (!%p218_p10)  ;;  %vm940_vm7 = vcmask (!%p218_p10), 777216  }
  0x12   : > { %v1242_v36 = vld [vmem:[%s1665_s2 + $0x10] sm:$0xff] (!%p218_p10)  ;;  %v1262_v41 = vld [vmem:[%s1665_s2 + $0x38] sm:$0xff] (!%p218_p10)  ;;  %vm576_vm8 = vcmask (!%p218_p10), 916480   ;;  %vm1031_vm9 = vcmask (!%p218_p10), 769024   ;;  %v1266_v53 = vld [vmem:[%s1665_s2 + $0x40] sm:$0xff] (!%p218_p10)  ;;  %s1277_s10 = sshll.u32 (!%p218_p10), %s1436_s18, 8 }
  0x13   : > { %v1246_v48 = vld [vmem:[%s1665_s2 + $0x18] sm:$0xff] (!%p218_p10)  ;;  %s1616_s21 = scalar_lea.hbm (!%p218_p10), %s1667_s4, %s1277_s10 }
  0x16   : > { %s267_s29 = scalar_select %p266_p11, %s1436_s18, 1 }
  0x18   : > { %s1296_s30 = smul.u32 12, %s267_s29  ;;  %s1452_s29 = smov 95  }
  0x1a   : > { %s273_s7 = scalar_lea.vmem %s1663_s0, %s1296_s30  ;;  %s1276_s8 = sadd.s32 8, %s1296_s30 }
  0x1b   : > { %v292_v0 = vld [vmem:[%s273_s7] sm:$0xff]  ;;  %s288_s11 = scalar_lea.vmem %s1664_s1, %s1276_s8  ;;  %s1453_s30 = smov 112  }
  0x1c   : > { %661 = vrot.lane.b32.xlu1 %v292_v0, %s1447_s12  ;;  %v293_v2 = vld [vmem:[%s288_s11] sm:$0xf]  ;;  %v295_v3 = vcombine.high %v292_v0, %v292_v0  ;;  %s258_s8 = sand.u32 1, %s1428_s16  }
  0x1d   : > { %665 = vrot.lane.b32.xlu0 %v293_v2, %s1447_s12  ;;  %s1232_s9 = sshll.u32 %s258_s8, 4  ;;  %s1117_s18 = scalar_lea.sflag [#allocation3], %s258_s8 }
  0x1e   : > { %1235 = vmatprep.subr.msk.mxu1 %vm307_vm0, %v295_v3  ;;  %s260_s11 = scalar_lea.vmem [#allocation2], %s1232_s9 }
  0x1f   : > { %1236 = vmatpush1.msk.msra.mxu1 %vm307_vm0, %v292_v0 }
  0x20   : > { %752 = vrot.lane.b32.xlu1 %v292_v0, %s1448_s13  ;;  %1237 = vmatmul.mubr.msk.f32.vlgmr.msra.gmra.mrb[0].mxu1 %vm303_vm1, %v302_v4 }
  0x21   : > { %756 = vrot.lane.b32.xlu0 %v293_v2, %s1448_s13  ;;  %468 = vmatprep.mubr.f32.mxu1 %v1446_v1 }
  0x24   : > { %754 = vrot.lane.b32.xlu1 %v295_v3, %s1448_s13 }
  0x25   : > { %663 = vrot.lane.b32.xlu0 %v295_v3, %s1447_s12  ;;  %s1133_s12 = sshll.u32 %s260_s11, 4  ;;  %s1618_s12 = int_to_ptr.vmem [resolvable:$true] %s1133_s12 }
  0x28   : > { %392 = vrot.lane.b32.xlu1 %v293_v2, %s1449_s22 }
  0x29   : > { %390 = vrot.lane.b32.xlu0 %v295_v3, %s1449_s22 }
  0x2c   : > { %845 = vrot.lane.b32.xlu1 %v295_v3, %s1450_s24 }
  0x2d   : > { %388 = vrot.lane.b32.xlu0 %v292_v0, %s1449_s22  ;;  %s1366_s22 = scalar_lea.vmem %s1618_s12, 256 }
  0x2e   : > { %p1367_p12 = scmp.ne.s32.totalorder %s1618_s12, %s1366_s22 }
  0x30   : > { %843 = vrot.lane.b32.xlu1 %v292_v0, %s1450_s24  ;;  %p1368_p13 = pnand %p1367_p12, %p1522_p4 }
  0x31   : > { %847 = vrot.lane.b32.xlu0 %v293_v2, %s1450_s24  ;;  %s1456_s24 = smov [#allocation2]  }
  0x32   : > { %p1369_p0 = pneg %p1368_p13 }
  0x34   : > { %483 = vrot.lane.b32.xlu1 %v293_v2, %s1451_s26 }
  0x35   : > { %481 = vrot.lane.b32.xlu0 %v295_v3, %s1451_s26 }
  0x38   : > { %936 = vrot.lane.b32.xlu1 %v295_v3, %s1452_s29 }
  0x39   : > { %479 = vrot.lane.b32.xlu0 %v292_v0, %s1451_s26  ;;  %s1370_s26 = sshll.u32 %s1456_s24, 4  ;;  %s1371_s26 = int_to_ptr.vmem [resolvable:$false] %s1370_s26 }
  0x3a   : > { %p1373_p1 = scmp.lt.s32.totalorder %s1618_s12, %s1371_s26 }
  0x3c   : > { %934 = vrot.lane.b32.xlu1 %v292_v0, %s1452_s29 }
  0x3d   : > { %938 = vrot.lane.b32.xlu0 %v293_v2, %s1452_s29  ;;  %s1372_s29 = scalar_lea.vmem %s1371_s26, 512 }
  0x3e   : > { %p1374_p2 = scmp.lt.s32.totalorder %s1372_s29, %s1366_s22 }
  0x40   : > { %574 = vrot.lane.b32.xlu1 %v293_v2, %s1453_s30  ;;  %p1375_p3 = por %p1374_p2, %p1373_p1 }
  0x41   : > { %572 = vrot.lane.b32.xlu0 %v295_v3, %s1453_s30 }
  0x42   : > { %p1376_p5 = pnand %p1375_p3, %p1369_p0 }
  0x44   : > { %1027 = vrot.lane.b32.xlu1 %v295_v3, %s1455_s5 }
  0x45   : > { %570 = vrot.lane.b32.xlu0 %v292_v0, %s1453_s30 }
  0x48   : > { %1025 = vrot.lane.b32.xlu1 %v292_v0, %s1455_s5 }
  0x49   : > { %1029 = vrot.lane.b32.xlu0 %v293_v2, %s1455_s5 }
  0x4d   : > { %299 = vperm.xlu0 %1364, %v296_v6  }
  0x8e   : > { %v662_v7 = vpop.permute.xlu1 %661 }
  0x8f   : > { %v666_v8 = vpop.permute.xlu0 %665 }
  0x92   : > { %v753_v9 = vpop.permute.xlu1 %752 }
  0x93   : > { %v757_v10 = vpop.permute.xlu0 %756 }
  0x96   : > { %v755_v11 = vpop.permute.xlu1 %754 }
  0x97   : > { %v664_v12 = vpop.permute.xlu0 %663  ;;  %v760_v16 = vsel %vm758_vm3, %v755_v11, %v757_v10  ;;  %v759_v18 = vsel %vm758_vm3, %v753_v9, %v755_v11 }
  0x98   : > { %v669_v13 = vsel %vm667_vm2, %v664_v12, %v666_v8  ;;  %v668_v14 = vsel %vm667_vm2, %v662_v7, %v664_v12 }
  0x99   : > { %1251 = vmatprep.subr.msk.mxu0 %vm307_vm0, %v669_v13 }
  0x9a   : > { %v393_v17 = vpop.permute.xlu1 %392  ;;  %1252 = vmatpush1.msk.msra.mxu0 %vm307_vm0, %v668_v14 }
  0x9b   : > { %1255 = vmatprep.subr.msk.mxu0 %vm307_vm0, %v760_v16  ;;  %v391_v19 = vpop.permute.xlu0 %390  ;;  %1253 = vmatmul.mubr.msk.f32.vlgmr.msra.gmra.mrb[0].mxu0 %vm303_vm1, %v1250_v15 }
  0x9c   : > { %v396_v20 = vsel %vm394_vm4, %v391_v19, %v393_v17  ;;  %1256 = vmatpush1.msk.msra.mxu0 %vm307_vm0, %v759_v18  ;;  %832 = vmatprep.mubr.f32.mxu0 %v1446_v1 }
  0x9d   : > { %1239 = vmatprep.subr.msk.mxu1 %vm307_vm0, %v396_v20 }
  0x9e   : > { %v846_v21 = vpop.permute.xlu1 %845 }
  0x9f   : > { %v389_v22 = vpop.permute.xlu0 %388 }
  0xa0   : > { %v395_v24 = vsel %vm394_vm4, %v389_v22, %v391_v19 }
  0xa1   : > { %1240 = vmatpush1.msk.msra.mxu1 %vm307_vm0, %v395_v24 }
  0xa2   : > { %v844_v26 = vpop.permute.xlu1 %843  ;;  %1241 = vmatmul.mubr.msk.f32.vlgmr.msra.gmra.mrb[0].mxu1 %vm303_vm1, %v1238_v23 }
  0xa3   : > { %v848_v27 = vpop.permute.xlu0 %847  ;;  %1257 = vmatmul.mubr.msk.f32.vlgmr.msra.gmra.mrb[0].mxu0 %vm303_vm1, %v1254_v25  ;;  %559 = vmatprep.mubr.f32.mxu1 %v1446_v1  ;;  %v850_v29 = vsel %vm849_vm5, %v844_v26, %v846_v21 }
  0xa4   : > { %v851_v28 = vsel %vm849_vm5, %v846_v21, %v848_v27  ;;  %923 = vmatprep.mubr.f32.mxu0 %v1446_v1 }
  0xa5   : > { %1259 = vmatprep.subr.msk.mxu0 %vm307_vm0, %v851_v28 }
  0xa6   : > { %v484_v30 = vpop.permute.xlu1 %483  ;;  %1260 = vmatpush1.msk.msra.mxu0 %vm307_vm0, %v850_v29 }
  0xa7   : > { %v482_v31 = vpop.permute.xlu0 %481 }
  0xa8   : > { %v487_v32 = vsel %vm485_vm6, %v482_v31, %v484_v30 }
  0xa9   : > { %1243 = vmatprep.subr.msk.mxu1 %vm307_vm0, %v487_v32 }
  0xaa   : > { %v937_v34 = vpop.permute.xlu1 %936 }
  0xab   : > { %v480_v35 = vpop.permute.xlu0 %479  ;;  %1261 = vmatmul.mubr.msk.f32.vlgmr.msra.gmra.mrb[0].mxu0 %vm303_vm1, %v1258_v33 }
  0xac   : > { %v486_v37 = vsel %vm485_vm6, %v480_v35, %v482_v31  ;;  %1014 = vmatprep.mubr.f32.mxu0 %v1446_v1 }
  0xad   : > { %1244 = vmatpush1.msk.msra.mxu1 %vm307_vm0, %v486_v37 }
  0xae   : > { %v935_v38 = vpop.permute.xlu1 %934  ;;  %1245 = vmatmul.mubr.msk.f32.vlgmr.msra.gmra.mrb[0].mxu1 %vm303_vm1, %v1242_v36 }
  0xaf   : > { %v939_v39 = vpop.permute.xlu0 %938  ;;  %650 = vmatprep.mubr.f32.mxu1 %v1446_v1  ;;  %v941_v42 = vsel %vm940_vm7, %v935_v38, %v937_v34 }
  0xb0   : > { %v942_v40 = vsel %vm940_vm7, %v937_v34, %v939_v39 }
  0xb1   : > { %1263 = vmatprep.subr.msk.mxu0 %vm307_vm0, %v942_v40 }
  0xb2   : > { %v575_v43 = vpop.permute.xlu1 %574  ;;  %1264 = vmatpush1.msk.msra.mxu0 %vm307_vm0, %v941_v42 }
  0xb3   : > { %v573_v44 = vpop.permute.xlu0 %572  ;;  %1265 = vmatmul.mubr.msk.f32.vlgmr.msra.gmra.mrb[0].mxu0 %vm303_vm1, %v1262_v41 }
  0xb4   : > { %v578_v45 = vsel %vm576_vm8, %v573_v44, %v575_v43  ;;  %1105 = vmatprep.mubr.f32.mxu0 %v1446_v1 }
  0xb5   : > { %1247 = vmatprep.subr.msk.mxu1 %vm307_vm0, %v578_v45 }
  0xb6   : > { %v1028_v46 = vpop.permute.xlu1 %1027 }
  0xb7   : > { %v571_v47 = vpop.permute.xlu0 %570 }
  0xb8   : > { %v577_v49 = vsel %vm576_vm8, %v571_v47, %v573_v44 }
  0xb9   : > { %1248 = vmatpush1.msk.msra.mxu1 %vm307_vm0, %v577_v49 }
  0xba   : > { %v1026_v50 = vpop.permute.xlu1 %1025  ;;  %1249 = vmatmul.mubr.msk.f32.vlgmr.msra.gmra.mrb[0].mxu1 %vm303_vm1, %v1246_v48 }
  0xbb   : > { %v1030_v51 = vpop.permute.xlu0 %1029  ;;  %v1032_v54 = vsel %vm1031_vm9, %v1026_v50, %v1028_v46 }
  0xbc   : > { %v1033_v52 = vsel %vm1031_vm9, %v1028_v46, %v1030_v51 }
  0xbd   : > { %1267 = vmatprep.subr.msk.mxu0 %vm307_vm0, %v1033_v52 }
  0xbe   : > { %1268 = vmatpush1.msk.msra.mxu0 %vm307_vm0, %v1032_v54 }
  0xbf   : > { %1269 = vmatmul.mubr.msk.f32.vlgmr.msra.gmra.mrb[0].mxu0 %vm303_vm1, %v1266_v53 }
  0xcc   : > { %v300_v56 = vpop.permute.xlu0 %299 }
 0x18d   : > { %v652_v55 = vpop.f32.mrb[0].mxu1 }
 0x18e   : > { %v654_v57 = vpop.f32.mrb[1].mxu1  ;;  %v1278_v58 = vadd.f32 %v652_v55, %v300_v56 }
 0x18f   : > { %v1280_v59 = vadd.f32 %v654_v57, %v300_v56 }
 0x192   : > { %v1107_v60 = vpop.f32.mrb[0].mxu0 }
 0x193   : > { %v1279_v61 = vadd.f32 %v1278_v58, %v1107_v60  ;;  %v1109_v62 = vpop.f32.mrb[1].mxu0 }
 0x194   : > { %v1281_v63 = vadd.f32 %v1280_v59, %v1109_v62 }
 0x195   : > { %1114 = vst [vmem:[%s260_s11] sm:$0xff] %v1279_v61 }
 0x196   : > { %1115 = vst [vmem:[%s260_s11 + $0x8] sm:$0xff] %v1281_v63 }
 0x197   : > { %1379 = shalt.err (!%p1376_p5)
}
 0x198   : > { %s1380_s30 = scalar_lea.hbm %s1616_s21, 256  ;;  %s1384_s7 = scalar_lea.hbm %s1667_s4, 512 }
 0x199   : > { %p1381_p6 = scmp.ne.s32.totalorder %s1616_s21, %s1380_s30  ;;  %p1385_p10 = scmp.lt.u32.totalorder %s1616_s21, %s1667_s4 }
 0x19a   : > { %p1386_p11 = scmp.lt.u32.totalorder %s1384_s7, %s1380_s30  ;;  %p1388_p13 = scmp.lt.u32.totalorder %s1380_s30, %s1616_s21 }
 0x19b   : > { %p1382_p7 = pnand %p1381_p6, %p1522_p4 }
 0x19c   : > { %p1387_p12 = por %p1386_p11, %p1385_p10 }
 0x19d   : > { %p1383_p9 = pneg %p1382_p7 }
 0x19e   : > { %p1389_p0 = por %p1388_p13, %p1387_p12 }
 0x1a0   : > { %p1390_p1 = pnand %p1389_p0, %p1383_p9 }
 0x1a2   : > { %1393 = shalt.err (!%p1390_p1)
}
 0x1a3   : > { %1298 = dma.vmem_to_hbm [thread:$0]  (%p1522_p4), %s1618_s12, 256, %s1616_s21, %s1117_s18  }
 0x1a4 PF: > { %p1305_p2 = scmp.ge.s32.totalorder %s1444_s20, 2  ;;  %s1145_s10 = sand.u32 1, %s1424_s15  }
 0x1a5   : > { %s1146_s11 = scalar_lea.sflag [#allocation3], %s1145_s10 }
 0x1a6   : > { %p1301_p3 = pnand %p1305_p2, %p1529_p8 }
 0x1a8   : > { %1419 = dma.done.wait (!%p1301_p3), %s1146_s11, 256  }
 0x1a9   : > { %1421 = vsyncadd (!%p1301_p3), %s1146_s11, 4294967040  ;;  %s17_s20 = sadd.s32 1, %s1444_s20   ;;  %s1670_s15 = smov %s1428_s16 }
 0x1aa   : > { %p14_p5 = scmp.ge.s32.totalorder %s17_s20, 4   ;;  %s1671_s16 = smov %s1432_s17 }
 0x1ab   : > { %s1672_s17 = smov %s1535_s28  ;;  %s1673_s18 = smov %s1440_s19 }
 0x1ac   : > { %s1674_s19 = smov %s1676_s23  ;;  %16 = sbr.rel (!%p14_p5) target bundleno = 4 (0x4), region = 82 }
 0x1b3   :  { %1151 = vsyncpa [#allocation3], 1 }
 0x1b4   :  { %1153 = vsyncpa [#allocation3 + $0x1], 1 }

</bundles_post_ra>
